<compile_context>
chip_gen: v6e
topology: v6e:2x2x1
jax: 0.10.0
libtpu: 0.0.40
codegen_flags: <defaults>
</compile_context>

<pallas_src>
import jax
import jax.numpy as jnp
from jax.experimental import pallas as pl
from jax.experimental.pallas import tpu as pltpu

ALPHA = 4


# ----------------------------------------------------------------------------
# Kernel
# ----------------------------------------------------------------------------
def _make_gather_kernel(n_slow: int, n_groups: int, per_group: int):
    """HBM->HBM DMA gather of `n_slow` frames, split into `n_groups` groups."""
    needs_guard = per_group * n_groups != n_slow

    def kernel(idx_ref, src_ref, out_ref, sems):
        # idx_ref : SMEM (n_slow,) int32     -- scalar-prefetched frame indices
        # src_ref : HBM  (C, T, H*W)         -- full input (memory_space=pl.ANY)
        # out_ref : HBM  (C, n_slow, H*W)    -- full output (memory_space=pl.ANY)
        # sems    : DMA semaphores, one per selected frame
        g = pl.program_id(0)

        def frame_copy(i):
            t = idx_ref[i]
            return pltpu.make_async_copy(
                src_ref.at[:, pl.ds(t, 1), :],   # (C, 1, H*W) strided HBM view
                out_ref.at[:, pl.ds(i, 1), :],   # (C, 1, H*W) strided HBM view
                sems.at[i],
            )

        def for_each_frame_in_group(frame_op):
            for j in range(per_group):
                i = g * per_group + j
                if needs_guard:
                    @pl.when(i < n_slow)
                    def _(i=i):
                        frame_op(i)
                else:
                    frame_op(i)

        # Issue every DMA of this group back-to-back (all in flight at once),
        # then wait for all of them.  No VMEM round trip, no vector body.
        for_each_frame_in_group(lambda i: frame_copy(i).start())
        for_each_frame_in_group(lambda i: frame_copy(i).wait())

    return kernel


# ----------------------------------------------------------------------------
# Helpers
# ----------------------------------------------------------------------------
def _slow_indices(T: int, n_slow: int) -> jax.Array:
    """Mirror torch.linspace(0, T-1, n_slow).long(): f32 linspace, truncate."""
    idx_f = jnp.linspace(0.0, float(T - 1), n_slow, dtype=jnp.float32)
    # Truncate toward zero like Tensor.long(); clip for DMA-bounds safety.
    return jnp.clip(idx_f.astype(jnp.int32), 0, max(T - 1, 0))


# ----------------------------------------------------------------------------
# Wrappers
# ----------------------------------------------------------------------------
def slow_pathway(frames: jax.Array, alpha: int = ALPHA) -> jax.Array:
    """frames[:, linspace(0, T-1, T//alpha).long()] via an HBM->HBM DMA gather."""
    C, T, H, W = frames.shape
    n_slow = T // alpha
    if n_slow == 0:
        # T < alpha: torch.linspace(..., 0) is empty -> empty slow pathway.
        return jnp.zeros((C, 0, H, W), frames.dtype)

    idx = _slow_indices(T, n_slow)
    HW = H * W
    src = frames.reshape(C, T, HW)  # free reshape (row-major contiguous)

    # NOTE: for tiny frames (frame_bytes well under ~100 KB) a plain
    # jnp.take(frames, idx, axis=1) is competitive; we always run the Pallas
    # DMA gather here so the kernel path is exercised.

    n_groups = 2 if n_slow >= 2 else 1          # v7x: one group per TensorCore
    per_group = -(-n_slow // n_groups)          # ceil division

    itemsize = jnp.dtype(frames.dtype).itemsize
    frame_bytes = C * HW * itemsize
    cost = pl.CostEstimate(
        flops=0,
        transcendentals=0,
        bytes_accessed=2 * n_slow * frame_bytes,  # read selected + write output
    )

    out = pl.pallas_call(
        _make_gather_kernel(n_slow, n_groups, per_group),
        out_shape=jax.ShapeDtypeStruct((C, n_slow, HW), frames.dtype),
        grid_spec=pltpu.PrefetchScalarGridSpec(
            num_scalar_prefetch=1,                     # idx -> SMEM
            grid=(n_groups,),
            in_specs=[pl.BlockSpec(memory_space=pl.ANY)],   # frames stay in HBM
            out_specs=pl.BlockSpec(memory_space=pl.ANY),    # output stays in HBM
            scratch_shapes=[pltpu.SemaphoreType.DMA((n_slow,))],
        ),
        compiler_params=pltpu.CompilerParams(
            dimension_semantics=("parallel",)),
        cost_estimate=cost,
    )(idx, src)
    return out.reshape(C, n_slow, H, W)


def pack_pathway(frames: jax.Array, alpha: int = ALPHA):
    """Equivalent of PackPathway.forward: returns [slow_pathway, fast_pathway].

    The fast pathway is the input tensor itself (PyTorch returns an alias);
    no copy kernel is launched.
    """
    return [slow_pathway(frames, alpha), frames]


# ----------------------------------------------------------------------------
# Main
# ----------------------------------------------------------------------------
if __name__ == "__main__":
    key = jax.random.PRNGKey(0)

    # (C, T, H, W): 3 channels, 16 frames, 16x16 spatial -> n_slow = 4.
    C, T, H, W = 3, 16, 16, 16
    frames = jax.random.normal(key, (C, T, H, W), dtype=jnp.float32)

    slow, fast = pack_pathway(frames)
    slow = jax.block_until_ready(slow)
    fast = jax.block_until_ready(fast)

    ref_idx = _slow_indices(T, T // ALPHA)                 # [0, 5, 10, 15]
    ref_slow = jnp.take(frames, ref_idx, axis=1)
    assert slow.shape == (C, T // ALPHA, H, W)
    assert fast.shape == (C, T, H, W)
    assert jnp.array_equal(slow, ref_slow)
    assert jnp.array_equal(fast, frames)

    # Odd spatial size (H*W not a multiple of 128): same DMA path, no fallback.
    frames2 = jax.random.normal(jax.random.PRNGKey(1), (3, 8, 10, 10), jnp.float32)
    slow2, fast2 = pack_pathway(frames2)
    slow2 = jax.block_until_ready(slow2)
    ref2 = jnp.take(frames2, _slow_indices(8, 2), axis=1)
    assert slow2.shape == (3, 2, 10, 10)
    assert jnp.array_equal(slow2, ref2)
    assert jnp.array_equal(fast2, frames2)

    # Odd n_slow (exercises the pl.when guard on the uneven last group).
    frames5 = jax.random.normal(jax.random.PRNGKey(4), (3, 12, 16, 16), jnp.float32)
    slow5, _ = pack_pathway(frames5)
    slow5 = jax.block_until_ready(slow5)
    ref5 = jnp.take(frames5, _slow_indices(12, 3), axis=1)
    assert slow5.shape == (3, 3, 16, 16)
    assert jnp.array_equal(slow5, ref5)

    # n_slow == 1.
    frames3 = jax.random.normal(jax.random.PRNGKey(2), (3, 4, 16, 16), jnp.float32)
    slow3, _ = pack_pathway(frames3)
    slow3 = jax.block_until_ready(slow3)
    assert jnp.array_equal(slow3, frames3[:, :1])          # linspace(0,3,1) -> [0]

    # T < alpha -> empty slow pathway.
    frames4 = jax.random.normal(jax.random.PRNGKey(3), (3, 3, 16, 16), jnp.float32)
    slow4, _ = pack_pathway(frames4)
    assert slow4.shape == (3, 0, 16, 16)

    print("KERNEL_OK")
</pallas_src>

<mosaic_0001>
module attributes {stable_mosaic.version = 11 : i64} {
  func.func @kernel(%arg0: i32, %arg1: memref<4xi32, #tpu.memory_space<smem>>, %arg2: memref<3x16x256xf32, #tpu.memory_space<any>>, %arg3: memref<3x4x256xf32, #tpu.memory_space<any>>, %arg4: memref<4x!tpu.dma_semaphore, #tpu.memory_space<semaphore_mem>>) attributes {dimension_semantics = [#tpu.dimension_semantics<parallel>], iteration_bounds = array<i64: 2>, scalar_prefetch = 1 : i64, scratch_operands = 1 : i64, tpu.core_type = #tpu.core_type<tc>, window_params = [{}, {}]} {
    %c2_i32 = arith.constant 2 : i32
    %0 = arith.muli %arg0, %c2_i32 : i32
    %c0_i32 = arith.constant 0 : i32
    %1 = arith.addi %0, %c0_i32 : i32
    %2 = arith.index_cast %1 : i32 to index
    %3 = memref.load %arg1[%2] : memref<4xi32, #tpu.memory_space<smem>>
    %c0_i32_0 = arith.constant 0 : i32
    %c0_i32_1 = arith.constant 0 : i32
    %4 = tpu.memref_slice %arg2[%c0_i32_0, %3, %c0_i32_1] : memref<3x16x256xf32, #tpu.memory_space<any>> -> memref<3x1x256xf32, #tpu.memory_space<any>>
    %c0_i32_2 = arith.constant 0 : i32
    %c0_i32_3 = arith.constant 0 : i32
    %5 = tpu.memref_slice %arg3[%c0_i32_2, %1, %c0_i32_3] : memref<3x4x256xf32, #tpu.memory_space<any>> -> memref<3x1x256xf32, #tpu.memory_space<any>>
    %6 = tpu.memref_slice %arg4[%1] : memref<4x!tpu.dma_semaphore, #tpu.memory_space<semaphore_mem>> -> memref<1x!tpu.dma_semaphore, #tpu.memory_space<semaphore_mem>>
    %7 = tpu.memref_squeeze %6 : memref<1x!tpu.dma_semaphore, #tpu.memory_space<semaphore_mem>> -> memref<!tpu.dma_semaphore, #tpu.memory_space<semaphore_mem>>
    tpu.enqueue_dma source(%4 : memref<3x1x256xf32, #tpu.memory_space<any>>) target(%5 : memref<3x1x256xf32, #tpu.memory_space<any>>) target_semaphore(%7 : memref<!tpu.dma_semaphore, #tpu.memory_space<semaphore_mem>>)
    %c2_i32_4 = arith.constant 2 : i32
    %8 = arith.muli %arg0, %c2_i32_4 : i32
    %c1_i32 = arith.constant 1 : i32
    %9 = arith.addi %8, %c1_i32 : i32
    %10 = arith.index_cast %9 : i32 to index
    %11 = memref.load %arg1[%10] : memref<4xi32, #tpu.memory_space<smem>>
    %c0_i32_5 = arith.constant 0 : i32
    %c0_i32_6 = arith.constant 0 : i32
    %12 = tpu.memref_slice %arg2[%c0_i32_5, %11, %c0_i32_6] : memref<3x16x256xf32, #tpu.memory_space<any>> -> memref<3x1x256xf32, #tpu.memory_space<any>>
    %c0_i32_7 = arith.constant 0 : i32
    %c0_i32_8 = arith.constant 0 : i32
    %13 = tpu.memref_slice %arg3[%c0_i32_7, %9, %c0_i32_8] : memref<3x4x256xf32, #tpu.memory_space<any>> -> memref<3x1x256xf32, #tpu.memory_space<any>>
    %14 = tpu.memref_slice %arg4[%9] : memref<4x!tpu.dma_semaphore, #tpu.memory_space<semaphore_mem>> -> memref<1x!tpu.dma_semaphore, #tpu.memory_space<semaphore_mem>>
    %15 = tpu.memref_squeeze %14 : memref<1x!tpu.dma_semaphore, #tpu.memory_space<semaphore_mem>> -> memref<!tpu.dma_semaphore, #tpu.memory_space<semaphore_mem>>
    tpu.enqueue_dma source(%12 : memref<3x1x256xf32, #tpu.memory_space<any>>) target(%13 : memref<3x1x256xf32, #tpu.memory_space<any>>) target_semaphore(%15 : memref<!tpu.dma_semaphore, #tpu.memory_space<semaphore_mem>>)
    %c2_i32_9 = arith.constant 2 : i32
    %16 = arith.muli %arg0, %c2_i32_9 : i32
    %c0_i32_10 = arith.constant 0 : i32
    %17 = arith.addi %16, %c0_i32_10 : i32
    %18 = arith.index_cast %17 : i32 to index
    %19 = memref.load %arg1[%18] : memref<4xi32, #tpu.memory_space<smem>>
    %c0_i32_11 = arith.constant 0 : i32
    %c0_i32_12 = arith.constant 0 : i32
    %20 = tpu.memref_slice %arg2[%c0_i32_11, %19, %c0_i32_12] : memref<3x16x256xf32, #tpu.memory_space<any>> -> memref<3x1x256xf32, #tpu.memory_space<any>>
    %c0_i32_13 = arith.constant 0 : i32
    %c0_i32_14 = arith.constant 0 : i32
    %21 = tpu.memref_slice %arg3[%c0_i32_13, %17, %c0_i32_14] : memref<3x4x256xf32, #tpu.memory_space<any>> -> memref<3x1x256xf32, #tpu.memory_space<any>>
    %22 = tpu.memref_slice %arg4[%17] : memref<4x!tpu.dma_semaphore, #tpu.memory_space<semaphore_mem>> -> memref<1x!tpu.dma_semaphore, #tpu.memory_space<semaphore_mem>>
    %23 = tpu.memref_squeeze %22 : memref<1x!tpu.dma_semaphore, #tpu.memory_space<semaphore_mem>> -> memref<!tpu.dma_semaphore, #tpu.memory_space<semaphore_mem>>
    tpu.wait_dma2 semaphore(%23 : memref<!tpu.dma_semaphore, #tpu.memory_space<semaphore_mem>>) src(%20 : memref<3x1x256xf32, #tpu.memory_space<any>>) dst(%21 : memref<3x1x256xf32, #tpu.memory_space<any>>)
    %c2_i32_15 = arith.constant 2 : i32
    %24 = arith.muli %arg0, %c2_i32_15 : i32
    %c1_i32_16 = arith.constant 1 : i32
    %25 = arith.addi %24, %c1_i32_16 : i32
    %26 = arith.index_cast %25 : i32 to index
    %27 = memref.load %arg1[%26] : memref<4xi32, #tpu.memory_space<smem>>
    %c0_i32_17 = arith.constant 0 : i32
    %c0_i32_18 = arith.constant 0 : i32
    %28 = tpu.memref_slice %arg2[%c0_i32_17, %27, %c0_i32_18] : memref<3x16x256xf32, #tpu.memory_space<any>> -> memref<3x1x256xf32, #tpu.memory_space<any>>
    %c0_i32_19 = arith.constant 0 : i32
    %c0_i32_20 = arith.constant 0 : i32
    %29 = tpu.memref_slice %arg3[%c0_i32_19, %25, %c0_i32_20] : memref<3x4x256xf32, #tpu.memory_space<any>> -> memref<3x1x256xf32, #tpu.memory_space<any>>
    %30 = tpu.memref_slice %arg4[%25] : memref<4x!tpu.dma_semaphore, #tpu.memory_space<semaphore_mem>> -> memref<1x!tpu.dma_semaphore, #tpu.memory_space<semaphore_mem>>
    %31 = tpu.memref_squeeze %30 : memref<1x!tpu.dma_semaphore, #tpu.memory_space<semaphore_mem>> -> memref<!tpu.dma_semaphore, #tpu.memory_space<semaphore_mem>>
    tpu.wait_dma2 semaphore(%31 : memref<!tpu.dma_semaphore, #tpu.memory_space<semaphore_mem>>) src(%28 : memref<3x1x256xf32, #tpu.memory_space<any>>) dst(%29 : memref<3x1x256xf32, #tpu.memory_space<any>>)
    return
  }
}

</mosaic_0001>

<bundles_post_ra>
// kernel: tpu_custom_call.1
= control target key start
LH: loop header
LB: loop body
LE: loop exit
PB: predicated region body
PF: predicated region fallthrough
CT: control target
= control target key end

     0   :  { %s199_s9 = smov [#allocation4]   ;;  %s263_s0 = inlined_call_operand.hbm [shape: s32[4], index: 0, kind: input, shape index: {}]   ;;  %s264_s1 = inlined_call_operand.hbm [shape: f32[3,16,256], index: 1, kind: input, shape index: {}]   ;;  %s265_s2 = inlined_call_operand.hbm [shape: f32[3,4,256], index: 2, kind: output, shape index: {}]  }
   0x1   :  { %8 = dma.hbm_to_smem %s263_s0, 16, %s199_s9, [#allocation3] }
   0x2   :  { %189 = dma.done.wait [#allocation3], 16 }
   0x3   :  { %190 = vsyncadd [#allocation3], 4294967280 }
   0x4   :  { %10 = sfence }
   0x5   :  { %s225_s12 = smov 0  }
   0x6 LB: > { %s231_s13 = sshll.u32 %s197_s12, 1  ;;  %s200_s19 = smov 512   ;;  %s197_s12 = sphi %s225_s12, %s16_s12  }
   0x7   : > { %s19_s14 = sld [smem:[#allocation4 + %s231_s13]]  ;;  %s26_s15 = sshrl.u32 %s231_s13, 2 }
   0x8   : > { %s27_s16 = sand.u32 3, %s231_s13   ;;  %s150_s0 = sshll.u32 %s26_s15, 3 }
   0x9   : > { %s29_s17 = sadd.s32 %s150_s0, %s27_s16  ;;  %39 = sst [smem:[#allocation6]] %s200_s19 }
   0xa   : > { %s151_s18 = sshll.u32 %s29_s17, 4  ;;  %s201_s23 = smov 128  }
   0xb   : > { %s31_s22 = scalar_lea.hbm %s265_s2, %s151_s18  ;;  %41 = sst [smem:[#allocation6 + $0x1]] %s201_s23 }
   0xc   : > { %s202_s27 = smov 2   ;;  %45 = sst [smem:[#allocation6 + $0x3]] %s201_s23 }
   0xd   : > { %s20_s24 = sshrl.u32 %s19_s14, 3  ;;  %s21_s25 = sand.u32 7, %s19_s14  }
   0xe   : > { %s148_s26 = sshll.u32 %s20_s24, 4  ;;  %43 = sst [smem:[#allocation6 + $0x2]] %s202_s27 }
   0xf   : > { %s23_s28 = sadd.s32 %s148_s26, %s21_s25  ;;  %s203_s5 = smov 64  }
  0x10   : > { %s149_s29 = sshll.u32 %s23_s28, 4  ;;  %47 = sst [smem:[#allocation6 + $0x4]] %s203_s5 }
  0x11   : > { %s25_s4 = scalar_lea.hbm %s264_s1, %s149_s29  ;;  %s204_s6 = smov 1  }
  0x12   : > { %49 = sst [smem:[#allocation6 + $0x5]] %s204_s6  ;;  %s245_s7 = scalar_lea.sflag [#allocation2], %s231_s13 }
  0x13   : > { %s205_s8 = smov 131072   ;;  %s206_s9 = smov 0  }
  0x14   : > { %51 = dma.general %s25_s4, 96, %s31_s22, %s245_s7, %s205_s8, [#allocation6], %s206_s9, 0  }
  0x15   : > { %s52_s10 = sadd.s32 1, %s231_s13  ;;  %73 = sst [smem:[#allocation8]] %s200_s19 }
  0x16   : > { %s53_s11 = sld [smem:[#allocation4 + %s52_s10]]  ;;  %s60_s14 = sshrl.u32 %s52_s10, 2 }
  0x17   : > { %s61_s15 = sand.u32 3, %s52_s10   ;;  %s154_s16 = sshll.u32 %s60_s14, 3 }
  0x18   : > { %s63_s0 = sadd.s32 %s154_s16, %s61_s15  ;;  %75 = sst [smem:[#allocation8 + $0x1]] %s201_s23 }
  0x19   : > { %s155_s17 = sshll.u32 %s63_s0, 4  ;;  %s141_s18 = scalar_lea.sflag %s245_s7, 1 [#allocation2] }
  0x1a   : > { %77 = sst [smem:[#allocation8 + $0x2]] %s202_s27  ;;  %s65_s24 = scalar_lea.hbm %s265_s2, %s155_s17 }
  0x1b   : > { %79 = sst [smem:[#allocation8 + $0x3]] %s201_s23 }
  0x1c   : > { %s54_s22 = sshrl.u32 %s53_s11, 3  ;;  %s55_s13 = sand.u32 7, %s53_s11  }
  0x1d   : > { %s152_s25 = sshll.u32 %s54_s22, 4  ;;  %81 = sst [smem:[#allocation8 + $0x4]] %s203_s5 }
  0x1e   : > { %s57_s26 = sadd.s32 %s152_s25, %s55_s13  ;;  %83 = sst [smem:[#allocation8 + $0x5]] %s204_s6 }
  0x1f   : > { %s153_s28 = sshll.u32 %s57_s26, 4 }
  0x20   : > { %s59_s30 = scalar_lea.hbm %s264_s1, %s153_s28 }
  0x21   : > { %85 = dma.general %s59_s30, 96, %s65_s24, %s141_s18, %s205_s8, [#allocation8], %s206_s9, 0  }
  0x22   : > { %191 = dma.done.wait %s245_s7, 96 }
  0x23   : > { %192 = vsyncadd %s245_s7, 4294967200 }
  0x24   : > { %193 = dma.done.wait %s141_s18, 96 }
  0x25   : > { %194 = vsyncadd %s141_s18, 4294967200  ;;  %s16_s12 = sadd.s32 1, %s197_s12  }
  0x26   : > { %p13_p0 = scmp.ge.s32.totalorder %s16_s12, 2  }
  0x28   :  { %15 = sbr.rel (!%p13_p0) target bundleno = 6 (0x6), region = 38 }
  0x2d   :  { %94 = vsyncmov [#allocation2] }
  0x30   :  { %s95_s23 = vpop.sfrf %94 }
  0x31   :  { %p157_p1 = scmp.ne.s32.totalorder %s95_s23, 0 }
  0x33   :  { %99 = shalt.err (%p157_p1)  }
  0x34   :  { %101 = vsyncmov [#allocation2 + $0x1] }
  0x37   :  { %s102_s27 = vpop.sfrf %101 }
  0x38   :  { %p158_p2 = scmp.ne.s32.totalorder %s102_s27, 0 }
  0x3a   :  { %106 = shalt.err (%p158_p2)  }
  0x3b   :  { %108 = vsyncmov [#allocation2 + $0x2] }
  0x3e   :  { %s109_s3 = vpop.sfrf %108 }
  0x3f   :  { %p159_p3 = scmp.ne.s32.totalorder %s109_s3, 0 }
  0x41   :  { %113 = shalt.err (%p159_p3)  }
  0x42   :  { %115 = vsyncmov [#allocation2 + $0x3] }
  0x45   :  { %s116_s4 = vpop.sfrf %115 }
  0x46   :  { %p160_p4 = scmp.ne.s32.totalorder %s116_s4, 0 }
  0x48   :  { %120 = shalt.err (%p160_p4)  }

</bundles_post_ra>
